<compile_context>
chip_gen: v5e
topology: v5e:2x2
jax: 0.10.0
libtpu: 0.0.40
codegen_flags: <defaults>
</compile_context>

<pallas_src>
import math

import jax
import jax.numpy as jnp
from jax.experimental import pallas as pl
from jax.experimental.pallas import tpu as pltpu

# ---- hyperparameters (the PyTorch module uses module-level globals) ----------
D_MODEL = 32
D_K = 16
D_V = 16
N_HEADS = 4
D_FF = 64
LN_EPS = 1e-5   # plain Python float -> trace-time literal, never a captured const


def _layernorm(y, gamma, beta):
    mean = jnp.mean(y, axis=-1, keepdims=True)
    var = jnp.mean((y - mean) ** 2, axis=-1, keepdims=True)
    return (y - mean) * jax.lax.rsqrt(var + LN_EPS) * gamma + beta


def decoder_layer_kernel(
    x_ref, mask_ref,
    wq_ref, wk_ref, wv_ref, wo_ref,
    g1_ref, b1_ref, w1_ref, w2_ref, g2_ref, b2_ref,
    out_ref, attn_ref,
):
    """One grid step == one batch element."""
    x = x_ref[0]                                   # (S, d_model) f32
    s_len = x.shape[0]

    # --- head-major QKV: batched MXU matmuls, zero in-kernel lane slicing -----
    xh = jnp.broadcast_to(x[None], (N_HEADS, s_len, D_MODEL))        # (H, S, dm)
    q = jnp.einsum("hsm,hmd->hsd", xh, wq_ref[...],
                   preferred_element_type=jnp.float32)               # (H, S, dk), pre-scaled
    k = jnp.einsum("hsm,hmd->hsd", xh, wk_ref[...],
                   preferred_element_type=jnp.float32)               # (H, S, dk)
    v = jnp.einsum("hsm,hmd->hsd", xh, wv_ref[...],
                   preferred_element_type=jnp.float32)               # (H, S, dv)

    # --- additive mask bias, broadcast over heads (no concat / repeat) --------
    bias = mask_ref[0].astype(jnp.float32) * (-1e9)                  # (S, S)

    # --- head-batched masked softmax attention ---------------------------------
    scores = jnp.einsum("hqd,hkd->hqk", q, k,
                        preferred_element_type=jnp.float32) + bias[None]  # (H, S, S)
    m = jnp.max(scores, axis=-1, keepdims=True)
    e = jnp.exp(scores - m)
    attn = e * pl.reciprocal(jnp.sum(e, axis=-1, keepdims=True), approx=True)

    # natural-layout store: (H, S, S) block of the (B, H, S, S) output, no relayout
    attn_ref[0] = attn

    ctx = jnp.einsum("hqk,hkd->hqd", attn, v,
                     preferred_element_type=jnp.float32)              # (H, S, dv)

    # --- output projection: contract heads on the MXU (no transpose/concat) ---
    attn_out = jnp.einsum("hsd,hdm->hsm", ctx, wo_ref[...],
                          preferred_element_type=jnp.float32).sum(axis=0)  # (S, dm)

    # --- residual + layernorm #1 ---
    y = _layernorm(attn_out + x, g1_ref[...], b1_ref[...])

    # --- position-wise FFN: relu(y @ W1) @ W2, residual + layernorm #2 ---
    h1 = jnp.maximum(jnp.dot(y, w1_ref[...],
                             preferred_element_type=jnp.float32), 0.0)
    f = jnp.dot(h1, w2_ref[...], preferred_element_type=jnp.float32)
    out_ref[0] = _layernorm(f + y, g2_ref[...], b2_ref[...])


def decoder_layer(x, mask, params):
    """x: (B, S, d_model) f32, mask: (B, S, S) int32 (1 = masked)."""
    B, S, D = x.shape
    assert D == D_MODEL

    # Wrapper-side weight prep (all tiny, pure XLA):
    #  * fold 1/sqrt(d_k) into Wq (exact power-of-two scale),
    #  * relayout Wq/Wk/Wv to head-major (H, d_model, d_k),
    #  * reshape Wo to (H, d_v, d_model) for the head-contraction.
    scale = 1.0 / math.sqrt(D_K)
    wq_h = (params["wq"] * scale).reshape(D_MODEL, N_HEADS, D_K).transpose(1, 0, 2)
    wk_h = params["wk"].reshape(D_MODEL, N_HEADS, D_K).transpose(1, 0, 2)
    wv_h = params["wv"].reshape(D_MODEL, N_HEADS, D_V).transpose(1, 0, 2)
    wo_h = params["wo"].reshape(N_HEADS, D_V, D_MODEL)

    vmem = pltpu.MemorySpace.VMEM

    def const_spec(a):
        # Weight/param arrays: full-array block, constant index map -> stays
        # VMEM-resident across grid steps (no per-step re-DMA).
        zeros = (0,) * a.ndim
        return pl.BlockSpec(a.shape, lambda b, zeros=zeros: zeros, memory_space=vmem)

    in_specs = (
        pl.BlockSpec((1, S, D_MODEL), lambda b: (b, 0, 0), memory_space=vmem),    # x
        pl.BlockSpec((1, S, S), lambda b: (b, 0, 0), memory_space=vmem),          # mask
        const_spec(wq_h), const_spec(wk_h), const_spec(wv_h), const_spec(wo_h),
        const_spec(params["g1"]), const_spec(params["b1"]),
        const_spec(params["w1"]), const_spec(params["w2"]),
        const_spec(params["g2"]), const_spec(params["b2"]),
    )
    out_specs = (
        pl.BlockSpec((1, S, D_MODEL), lambda b: (b, 0, 0), memory_space=vmem),       # dec_outputs
        pl.BlockSpec((1, N_HEADS, S, S), lambda b: (b, 0, 0, 0), memory_space=vmem), # dec_self_attn
    )
    out_shapes = (
        jax.ShapeDtypeStruct((B, S, D_MODEL), jnp.float32),
        jax.ShapeDtypeStruct((B, N_HEADS, S, S), jnp.float32),
    )

    dec_outputs, dec_self_attn = pl.pallas_call(
        decoder_layer_kernel,
        grid=(B,),
        in_specs=in_specs,
        out_specs=out_specs,
        out_shape=out_shapes,
        compiler_params=pltpu.CompilerParams(
            dimension_semantics=("parallel",)),    # shard batch across TCs on v7x
    )(x, mask, wq_h, wk_h, wv_h, wo_h,
      params["g1"], params["b1"], params["w1"], params["w2"],
      params["g2"], params["b2"])

    return dec_outputs, dec_self_attn


# ----------------------------- pure-JAX reference -----------------------------
def decoder_layer_ref(x, mask, p):
    B, S, _ = x.shape
    q = (x @ p["wq"]).reshape(B, S, N_HEADS, D_K).transpose(0, 2, 1, 3)
    k = (x @ p["wk"]).reshape(B, S, N_HEADS, D_K).transpose(0, 2, 1, 3)
    v = (x @ p["wv"]).reshape(B, S, N_HEADS, D_V).transpose(0, 2, 1, 3)
    scores = jnp.einsum("bhqd,bhkd->bhqk", q, k) / math.sqrt(D_K)
    scores = jnp.where(mask[:, None] != 0, -1e9, scores)
    attn = jax.nn.softmax(scores, axis=-1)
    ctx = jnp.einsum("bhqk,bhkd->bhqd", attn, v)
    ctx = ctx.transpose(0, 2, 1, 3).reshape(B, S, N_HEADS * D_V)
    out = _layernorm(ctx @ p["wo"] + x, p["g1"][0], p["b1"][0])
    f = jnp.maximum(out @ p["w1"], 0.0) @ p["w2"]
    return _layernorm(f + out, p["g2"][0], p["b2"][0]), attn


# ----------------------------------- main --------------------------------------
if __name__ == "__main__":
    key = jax.random.PRNGKey(0)
    ks = jax.random.split(key, 8)

    B, S = 2, 8
    scale = 0.1
    params = {
        "wq": scale * jax.random.normal(ks[0], (D_MODEL, N_HEADS * D_K), jnp.float32),
        "wk": scale * jax.random.normal(ks[1], (D_MODEL, N_HEADS * D_K), jnp.float32),
        "wv": scale * jax.random.normal(ks[2], (D_MODEL, N_HEADS * D_V), jnp.float32),
        "wo": scale * jax.random.normal(ks[3], (N_HEADS * D_V, D_MODEL), jnp.float32),
        "g1": jnp.ones((1, D_MODEL), jnp.float32),
        "b1": jnp.zeros((1, D_MODEL), jnp.float32),
        "w1": scale * jax.random.normal(ks[4], (D_MODEL, D_FF), jnp.float32),
        "w2": scale * jax.random.normal(ks[5], (D_FF, D_MODEL), jnp.float32),
        "g2": jnp.ones((1, D_MODEL), jnp.float32),
        "b2": jnp.zeros((1, D_MODEL), jnp.float32),
    }

    x = jax.random.normal(ks[6], (B, S, D_MODEL), jnp.float32)
    # causal (subsequent) mask, as used for decoder self-attention (1 = masked)
    causal = jnp.triu(jnp.ones((S, S), jnp.int32), k=1)
    mask = jnp.broadcast_to(causal, (B, S, S)).astype(jnp.int32)

    dec_out, dec_attn = decoder_layer(x, mask, params)
    jax.block_until_ready((dec_out, dec_attn))

    ref_out, ref_attn = decoder_layer_ref(x, mask, params)
    # tolerances sized for the approximate (EUP) softmax reciprocal
    assert jnp.allclose(dec_out, ref_out, atol=2e-3, rtol=2e-3), "dec_outputs mismatch"
    assert jnp.allclose(dec_attn, ref_attn, atol=2e-3, rtol=2e-3), "dec_self_attn mismatch"

    print("KERNEL_OK")
</pallas_src>

<mosaic_0001>
module attributes {stable_mosaic.version = 11 : i64} {
  func.func @decoder_layer_kernel(%arg0: i32, %arg1: memref<1x8x32xf32, #tpu.memory_space<vmem>>, %arg2: memref<1x8x8xi32, #tpu.memory_space<vmem>>, %arg3: memref<4x32x16xf32, #tpu.memory_space<vmem>>, %arg4: memref<4x32x16xf32, #tpu.memory_space<vmem>>, %arg5: memref<4x32x16xf32, #tpu.memory_space<vmem>>, %arg6: memref<4x16x32xf32, #tpu.memory_space<vmem>>, %arg7: memref<1x32xf32, #tpu.memory_space<vmem>>, %arg8: memref<1x32xf32, #tpu.memory_space<vmem>>, %arg9: memref<32x64xf32, #tpu.memory_space<vmem>>, %arg10: memref<64x32xf32, #tpu.memory_space<vmem>>, %arg11: memref<1x32xf32, #tpu.memory_space<vmem>>, %arg12: memref<1x32xf32, #tpu.memory_space<vmem>>, %arg13: memref<1x8x32xf32, #tpu.memory_space<vmem>>, %arg14: memref<1x4x8x8xf32, #tpu.memory_space<vmem>>) attributes {dimension_semantics = [#tpu.dimension_semantics<parallel>], iteration_bounds = array<i64: 2>, scalar_prefetch = 0 : i64, scratch_operands = 0 : i64, tpu.core_type = #tpu.core_type<tc>, window_params = [{transform_indices = @transform_0, window_bounds = array<i64: 1, 8, 32>}, {transform_indices = @transform_1, window_bounds = array<i64: 1, 8, 8>}, {pipeline_mode = #tpu.pipeline_mode<synchronous>, transform_indices = @transform_2, window_bounds = array<i64: 4, 32, 16>}, {pipeline_mode = #tpu.pipeline_mode<synchronous>, transform_indices = @transform_3, window_bounds = array<i64: 4, 32, 16>}, {pipeline_mode = #tpu.pipeline_mode<synchronous>, transform_indices = @transform_4, window_bounds = array<i64: 4, 32, 16>}, {pipeline_mode = #tpu.pipeline_mode<synchronous>, transform_indices = @transform_5, window_bounds = array<i64: 4, 16, 32>}, {pipeline_mode = #tpu.pipeline_mode<synchronous>, transform_indices = @transform_6, window_bounds = array<i64: 1, 32>}, {pipeline_mode = #tpu.pipeline_mode<synchronous>, transform_indices = @transform_7, window_bounds = array<i64: 1, 32>}, {pipeline_mode = #tpu.pipeline_mode<synchronous>, transform_indices = @transform_8, window_bounds = array<i64: 32, 64>}, {pipeline_mode = #tpu.pipeline_mode<synchronous>, transform_indices = @transform_9, window_bounds = array<i64: 64, 32>}, {pipeline_mode = #tpu.pipeline_mode<synchronous>, transform_indices = @transform_10, window_bounds = array<i64: 1, 32>}, {pipeline_mode = #tpu.pipeline_mode<synchronous>, transform_indices = @transform_11, window_bounds = array<i64: 1, 32>}, {transform_indices = @transform_12, window_bounds = array<i64: 1, 8, 32>}, {transform_indices = @transform_13, window_bounds = array<i64: 1, 4, 8, 8>}]} {
    %c0 = arith.constant 0 : index
    %c0_0 = arith.constant 0 : index
    %c0_1 = arith.constant 0 : index
    %0 = vector.load %arg1[%c0, %c0_0, %c0_1] : memref<1x8x32xf32, #tpu.memory_space<vmem>>, vector<1x8x32xf32>
    %1 = vector.shape_cast %0 : vector<1x8x32xf32> to vector<8x32xf32>
    %2 = vector.shape_cast %1 : vector<8x32xf32> to vector<1x8x32xf32>
    %3 = vector.shape_cast %2 : vector<1x8x32xf32> to vector<1x8x32xf32>
    %4 = vector.broadcast %3 : vector<1x8x32xf32> to vector<4x8x32xf32>
    %c0_2 = arith.constant 0 : index
    %c0_3 = arith.constant 0 : index
    %c0_4 = arith.constant 0 : index
    %5 = vector.load %arg3[%c0_2, %c0_3, %c0_4] : memref<4x32x16xf32, #tpu.memory_space<vmem>>, vector<4x32x16xf32>
    "tpu.trace_start"() <{level = 10 : i32, message = "hsm,hmd->hsd"}> : () -> ()
    %cst = arith.constant dense<0.000000e+00> : vector<4x8x16xf32>
    %6 = tpu.matmul %4, %5, %cst {dimension_numbers = #tpu.dot_dimension_numbers<[2], [1], [1], [2], [0, 0, 0, 1, 1, 2], [0], [0]>} : vector<4x8x32xf32>, vector<4x32x16xf32>, vector<4x8x16xf32> -> vector<4x8x16xf32>
    "tpu.trace_stop"() : () -> ()
    %c0_5 = arith.constant 0 : index
    %c0_6 = arith.constant 0 : index
    %c0_7 = arith.constant 0 : index
    %7 = vector.load %arg4[%c0_5, %c0_6, %c0_7] : memref<4x32x16xf32, #tpu.memory_space<vmem>>, vector<4x32x16xf32>
    "tpu.trace_start"() <{level = 10 : i32, message = "hsm,hmd->hsd"}> : () -> ()
    %cst_8 = arith.constant dense<0.000000e+00> : vector<4x8x16xf32>
    %8 = tpu.matmul %4, %7, %cst_8 {dimension_numbers = #tpu.dot_dimension_numbers<[2], [1], [1], [2], [0, 0, 0, 1, 1, 2], [0], [0]>} : vector<4x8x32xf32>, vector<4x32x16xf32>, vector<4x8x16xf32> -> vector<4x8x16xf32>
    "tpu.trace_stop"() : () -> ()
    %c0_9 = arith.constant 0 : index
    %c0_10 = arith.constant 0 : index
    %c0_11 = arith.constant 0 : index
    %9 = vector.load %arg5[%c0_9, %c0_10, %c0_11] : memref<4x32x16xf32, #tpu.memory_space<vmem>>, vector<4x32x16xf32>
    "tpu.trace_start"() <{level = 10 : i32, message = "hsm,hmd->hsd"}> : () -> ()
    %cst_12 = arith.constant dense<0.000000e+00> : vector<4x8x16xf32>
    %10 = tpu.matmul %4, %9, %cst_12 {dimension_numbers = #tpu.dot_dimension_numbers<[2], [1], [1], [2], [0, 0, 0, 1, 1, 2], [0], [0]>} : vector<4x8x32xf32>, vector<4x32x16xf32>, vector<4x8x16xf32> -> vector<4x8x16xf32>
    "tpu.trace_stop"() : () -> ()
    %c0_13 = arith.constant 0 : index
    %c0_14 = arith.constant 0 : index
    %c0_15 = arith.constant 0 : index
    %11 = vector.load %arg2[%c0_13, %c0_14, %c0_15] : memref<1x8x8xi32, #tpu.memory_space<vmem>>, vector<1x8x8xi32>
    %12 = vector.shape_cast %11 : vector<1x8x8xi32> to vector<8x8xi32>
    %13 = arith.sitofp %12 : vector<8x8xi32> to vector<8x8xf32>
    %cst_16 = arith.constant -1.000000e+09 : f32
    %14 = vector.broadcast %cst_16 : f32 to vector<8x8xf32>
    %15 = arith.mulf %13, %14 : vector<8x8xf32>
    "tpu.trace_start"() <{level = 10 : i32, message = "hqd,hkd->hqk"}> : () -> ()
    %cst_17 = arith.constant dense<0.000000e+00> : vector<4x8x8xf32>
    %16 = tpu.matmul %6, %8, %cst_17 {dimension_numbers = #tpu.dot_dimension_numbers<[2], [2], [1], [1], [0, 0, 0, 1, 1, 1], [0], [0]>} : vector<4x8x16xf32>, vector<4x8x16xf32>, vector<4x8x8xf32> -> vector<4x8x8xf32>
    "tpu.trace_stop"() : () -> ()
    %17 = vector.shape_cast %15 : vector<8x8xf32> to vector<1x8x8xf32>
    %18 = vector.broadcast %17 : vector<1x8x8xf32> to vector<4x8x8xf32>
    %19 = arith.addf %16, %18 : vector<4x8x8xf32>
    %cst_18 = arith.constant dense<0xFF800000> : vector<4x8xf32>
    %20 = vector.multi_reduction <maximumf>, %19, %cst_18 [2] : vector<4x8x8xf32> to vector<4x8xf32>
    %21 = vector.shape_cast %20 : vector<4x8xf32> to vector<4x8x1xf32>
    %22 = vector.broadcast %21 : vector<4x8x1xf32> to vector<4x8x8xf32>
    %23 = arith.subf %19, %22 : vector<4x8x8xf32>
    %24 = math.exp %23 : vector<4x8x8xf32>
    %cst_19 = arith.constant dense<0.000000e+00> : vector<4x8xf32>
    %25 = vector.multi_reduction <add>, %24, %cst_19 [2] : vector<4x8x8xf32> to vector<4x8xf32>
    %26 = vector.shape_cast %25 : vector<4x8xf32> to vector<4x8x1xf32>
    %27 = tpu.reciprocal %26 {approx = true} : vector<4x8x1xf32> -> vector<4x8x1xf32>
    %28 = vector.broadcast %27 : vector<4x8x1xf32> to vector<4x8x8xf32>
    %29 = arith.mulf %24, %28 : vector<4x8x8xf32>
    %c0_20 = arith.constant 0 : index
    %c0_21 = arith.constant 0 : index
    %c0_22 = arith.constant 0 : index
    %c0_23 = arith.constant 0 : index
    %30 = vector.load %arg14[%c0_20, %c0_21, %c0_22, %c0_23] : memref<1x4x8x8xf32, #tpu.memory_space<vmem>>, vector<1x4x8x8xf32>
    %31 = vector.shape_cast %30 : vector<1x4x8x8xf32> to vector<4x8x8xf32>
    %32 = vector.shape_cast %29 : vector<4x8x8xf32> to vector<1x4x8x8xf32>
    tpu.vector_store %arg14[%c0_20, %c0_21, %c0_22, %c0_23], %32 {strides = array<i32>} : memref<1x4x8x8xf32, #tpu.memory_space<vmem>>, vector<1x4x8x8xf32>,
    "tpu.trace_start"() <{level = 10 : i32, message = "hqk,hkd->hqd"}> : () -> ()
    %cst_24 = arith.constant dense<0.000000e+00> : vector<4x8x16xf32>
    %33 = tpu.matmul %29, %10, %cst_24 {dimension_numbers = #tpu.dot_dimension_numbers<[2], [1], [1], [2], [0, 0, 0, 1, 1, 2], [0], [0]>} : vector<4x8x8xf32>, vector<4x8x16xf32>, vector<4x8x16xf32> -> vector<4x8x16xf32>
    "tpu.trace_stop"() : () -> ()
    %c0_25 = arith.constant 0 : index
    %c0_26 = arith.constant 0 : index
    %c0_27 = arith.constant 0 : index
    %34 = vector.load %arg6[%c0_25, %c0_26, %c0_27] : memref<4x16x32xf32, #tpu.memory_space<vmem>>, vector<4x16x32xf32>
    "tpu.trace_start"() <{level = 10 : i32, message = "hsd,hdm->hsm"}> : () -> ()
    %cst_28 = arith.constant dense<0.000000e+00> : vector<4x8x32xf32>
    %35 = tpu.matmul %33, %34, %cst_28 {dimension_numbers = #tpu.dot_dimension_numbers<[2], [1], [1], [2], [0, 0, 0, 1, 1, 2], [0], [0]>} : vector<4x8x16xf32>, vector<4x16x32xf32>, vector<4x8x32xf32> -> vector<4x8x32xf32>
    "tpu.trace_stop"() : () -> ()
    %cst_29 = arith.constant dense<0.000000e+00> : vector<8x32xf32>
    %36 = vector.multi_reduction <add>, %35, %cst_29 [0] : vector<4x8x32xf32> to vector<8x32xf32>
    %37 = arith.addf %36, %1 : vector<8x32xf32>
    %c0_30 = arith.constant 0 : index
    %c0_31 = arith.constant 0 : index
    %38 = vector.load %arg7[%c0_30, %c0_31] : memref<1x32xf32, #tpu.memory_space<vmem>>, vector<1x32xf32>
    %c0_32 = arith.constant 0 : index
    %c0_33 = arith.constant 0 : index
    %39 = vector.load %arg8[%c0_32, %c0_33] : memref<1x32xf32, #tpu.memory_space<vmem>>, vector<1x32xf32>
    %cst_34 = arith.constant dense<0.000000e+00> : vector<8xf32>
    %40 = vector.multi_reduction <add>, %37, %cst_34 [1] : vector<8x32xf32> to vector<8xf32>
    %41 = vector.shape_cast %40 : vector<8xf32> to vector<8x1xf32>
    %cst_35 = arith.constant 3.200000e+01 : f32
    %42 = vector.broadcast %cst_35 : f32 to vector<8x1xf32>
    %43 = arith.divf %41, %42 : vector<8x1xf32>
    %44 = vector.broadcast %43 : vector<8x1xf32> to vector<8x32xf32>
    %45 = arith.subf %37, %44 : vector<8x32xf32>
    %46 = arith.mulf %45, %45 : vector<8x32xf32>
    %cst_36 = arith.constant dense<0.000000e+00> : vector<8xf32>
    %47 = vector.multi_reduction <add>, %46, %cst_36 [1] : vector<8x32xf32> to vector<8xf32>
    %48 = vector.shape_cast %47 : vector<8xf32> to vector<8x1xf32>
    %cst_37 = arith.constant 3.200000e+01 : f32
    %49 = vector.broadcast %cst_37 : f32 to vector<8x1xf32>
    %50 = arith.divf %48, %49 : vector<8x1xf32>
    %51 = vector.broadcast %43 : vector<8x1xf32> to vector<8x32xf32>
    %52 = arith.subf %37, %51 : vector<8x32xf32>
    %cst_38 = arith.constant 9.99999974E-6 : f32
    %53 = vector.broadcast %cst_38 : f32 to vector<8x1xf32>
    %54 = arith.addf %50, %53 : vector<8x1xf32>
    %55 = math.rsqrt %54 : vector<8x1xf32>
    %56 = vector.broadcast %55 : vector<8x1xf32> to vector<8x32xf32>
    %57 = arith.mulf %52, %56 : vector<8x32xf32>
    %58 = vector.broadcast %38 : vector<1x32xf32> to vector<8x32xf32>
    %59 = arith.mulf %57, %58 : vector<8x32xf32>
    %60 = vector.broadcast %39 : vector<1x32xf32> to vector<8x32xf32>
    %61 = arith.addf %59, %60 : vector<8x32xf32>
    %c0_39 = arith.constant 0 : index
    %c0_40 = arith.constant 0 : index
    %62 = vector.load %arg9[%c0_39, %c0_40] : memref<32x64xf32, #tpu.memory_space<vmem>>, vector<32x64xf32>
    %cst_41 = arith.constant dense<0.000000e+00> : vector<8x64xf32>
    %63 = tpu.matmul %61, %62, %cst_41 {dimension_numbers = #tpu.dot_dimension_numbers<[1], [0], [0], [1], [0, 0, 1, 1], [], []>} : vector<8x32xf32>, vector<32x64xf32>, vector<8x64xf32> -> vector<8x64xf32>
    %cst_42 = arith.constant 0.000000e+00 : f32
    %64 = vector.broadcast %cst_42 : f32 to vector<8x64xf32>
    %65 = arith.maximumf %63, %64 : vector<8x64xf32>
    %c0_43 = arith.constant 0 : index
    %c0_44 = arith.constant 0 : index
    %66 = vector.load %arg10[%c0_43, %c0_44] : memref<64x32xf32, #tpu.memory_space<vmem>>, vector<64x32xf32>
    %cst_45 = arith.constant dense<0.000000e+00> : vector<8x32xf32>
    %67 = tpu.matmul %65, %66, %cst_45 {dimension_numbers = #tpu.dot_dimension_numbers<[1], [0], [0], [1], [0, 0, 1, 1], [], []>} : vector<8x64xf32>, vector<64x32xf32>, vector<8x32xf32> -> vector<8x32xf32>
    %68 = arith.addf %67, %61 : vector<8x32xf32>
    %c0_46 = arith.constant 0 : index
    %c0_47 = arith.constant 0 : index
    %69 = vector.load %arg11[%c0_46, %c0_47] : memref<1x32xf32, #tpu.memory_space<vmem>>, vector<1x32xf32>
    %c0_48 = arith.constant 0 : index
    %c0_49 = arith.constant 0 : index
    %70 = vector.load %arg12[%c0_48, %c0_49] : memref<1x32xf32, #tpu.memory_space<vmem>>, vector<1x32xf32>
    %cst_50 = arith.constant dense<0.000000e+00> : vector<8xf32>
    %71 = vector.multi_reduction <add>, %68, %cst_50 [1] : vector<8x32xf32> to vector<8xf32>
    %72 = vector.shape_cast %71 : vector<8xf32> to vector<8x1xf32>
    %cst_51 = arith.constant 3.200000e+01 : f32
    %73 = vector.broadcast %cst_51 : f32 to vector<8x1xf32>
    %74 = arith.divf %72, %73 : vector<8x1xf32>
    %75 = vector.broadcast %74 : vector<8x1xf32> to vector<8x32xf32>
    %76 = arith.subf %68, %75 : vector<8x32xf32>
    %77 = arith.mulf %76, %76 : vector<8x32xf32>
    %cst_52 = arith.constant dense<0.000000e+00> : vector<8xf32>
    %78 = vector.multi_reduction <add>, %77, %cst_52 [1] : vector<8x32xf32> to vector<8xf32>
    %79 = vector.shape_cast %78 : vector<8xf32> to vector<8x1xf32>
    %cst_53 = arith.constant 3.200000e+01 : f32
    %80 = vector.broadcast %cst_53 : f32 to vector<8x1xf32>
    %81 = arith.divf %79, %80 : vector<8x1xf32>
    %82 = vector.broadcast %74 : vector<8x1xf32> to vector<8x32xf32>
    %83 = arith.subf %68, %82 : vector<8x32xf32>
    %cst_54 = arith.constant 9.99999974E-6 : f32
    %84 = vector.broadcast %cst_54 : f32 to vector<8x1xf32>
    %85 = arith.addf %81, %84 : vector<8x1xf32>
    %86 = math.rsqrt %85 : vector<8x1xf32>
    %87 = vector.broadcast %86 : vector<8x1xf32> to vector<8x32xf32>
    %88 = arith.mulf %83, %87 : vector<8x32xf32>
    %89 = vector.broadcast %69 : vector<1x32xf32> to vector<8x32xf32>
    %90 = arith.mulf %88, %89 : vector<8x32xf32>
    %91 = vector.broadcast %70 : vector<1x32xf32> to vector<8x32xf32>
    %92 = arith.addf %90, %91 : vector<8x32xf32>
    %c0_55 = arith.constant 0 : index
    %c0_56 = arith.constant 0 : index
    %c0_57 = arith.constant 0 : index
    %93 = vector.load %arg13[%c0_55, %c0_56, %c0_57] : memref<1x8x32xf32, #tpu.memory_space<vmem>>, vector<1x8x32xf32>
    %94 = vector.shape_cast %93 : vector<1x8x32xf32> to vector<8x32xf32>
    %95 = vector.shape_cast %92 : vector<8x32xf32> to vector<1x8x32xf32>
    tpu.vector_store %arg13[%c0_55, %c0_56, %c0_57], %95 {strides = array<i32>} : memref<1x8x32xf32, #tpu.memory_space<vmem>>, vector<1x8x32xf32>,
    return
  }
  func.func @transform_0(%arg0: i32) -> (i32, i32, i32) {
    %c0_i32 = arith.constant 0 : i32
    %c0_i32_0 = arith.constant 0 : i32
    %c0_i32_1 = arith.constant 0 : i32
    return %arg0, %c0_i32, %c0_i32_0 : i32, i32, i32
  }
  func.func @transform_1(%arg0: i32) -> (i32, i32, i32) {
    %c0_i32 = arith.constant 0 : i32
    %c0_i32_0 = arith.constant 0 : i32
    %c0_i32_1 = arith.constant 0 : i32
    return %arg0, %c0_i32, %c0_i32_0 : i32, i32, i32
  }
  func.func @transform_2(%arg0: i32) -> (i32, i32, i32) {
    %c0_i32 = arith.constant 0 : i32
    %c0_i32_0 = arith.constant 0 : i32
    %c0_i32_1 = arith.constant 0 : i32
    %c0_i32_2 = arith.constant 0 : i32
    return %c0_i32, %c0_i32_0, %c0_i32_1 : i32, i32, i32
  }
  func.func @transform_3(%arg0: i32) -> (i32, i32, i32) {
    %c0_i32 = arith.constant 0 : i32
    %c0_i32_0 = arith.constant 0 : i32
    %c0_i32_1 = arith.constant 0 : i32
    %c0_i32_2 = arith.constant 0 : i32
    return %c0_i32, %c0_i32_0, %c0_i32_1 : i32, i32, i32
  }
  func.func @transform_4(%arg0: i32) -> (i32, i32, i32) {
    %c0_i32 = arith.constant 0 : i32
    %c0_i32_0 = arith.constant 0 : i32
    %c0_i32_1 = arith.constant 0 : i32
    %c0_i32_2 = arith.constant 0 : i32
    return %c0_i32, %c0_i32_0, %c0_i32_1 : i32, i32, i32
  }
  func.func @transform_5(%arg0: i32) -> (i32, i32, i32) {
    %c0_i32 = arith.constant 0 : i32
    %c0_i32_0 = arith.constant 0 : i32
    %c0_i32_1 = arith.constant 0 : i32
    %c0_i32_2 = arith.constant 0 : i32
    return %c0_i32, %c0_i32_0, %c0_i32_1 : i32, i32, i32
  }
  func.func @transform_6(%arg0: i32) -> (i32, i32) {
    %c0_i32 = arith.constant 0 : i32
    %c0_i32_0 = arith.constant 0 : i32
    %c0_i32_1 = arith.constant 0 : i32
    return %c0_i32, %c0_i32_0 : i32, i32
  }
  func.func @transform_7(%arg0: i32) -> (i32, i32) {
    %c0_i32 = arith.constant 0 : i32
    %c0_i32_0 = arith.constant 0 : i32
    %c0_i32_1 = arith.constant 0 : i32
    return %c0_i32, %c0_i32_0 : i32, i32
  }
  func.func @transform_8(%arg0: i32) -> (i32, i32) {
    %c0_i32 = arith.constant 0 : i32
    %c0_i32_0 = arith.constant 0 : i32
    %c0_i32_1 = arith.constant 0 : i32
    return %c0_i32, %c0_i32_0 : i32, i32
  }
  func.func @transform_9(%arg0: i32) -> (i32, i32) {
    %c0_i32 = arith.constant 0 : i32
    %c0_i32_0 = arith.constant 0 : i32
    %c0_i32_1 = arith.constant 0 : i32
    return %c0_i32, %c0_i32_0 : i32, i32
  }
  func.func @transform_10(%arg0: i32) -> (i32, i32) {
    %c0_i32 = arith.constant 0 : i32
    %c0_i32_0 = arith.constant 0 : i32
    %c0_i32_1 = arith.constant 0 : i32
    return %c0_i32, %c0_i32_0 : i32, i32
  }
  func.func @transform_11(%arg0: i32) -> (i32, i32) {
    %c0_i32 = arith.constant 0 : i32
    %c0_i32_0 = arith.constant 0 : i32
    %c0_i32_1 = arith.constant 0 : i32
    return %c0_i32, %c0_i32_0 : i32, i32
  }
  func.func @transform_12(%arg0: i32) -> (i32, i32, i32) {
    %c0_i32 = arith.constant 0 : i32
    %c0_i32_0 = arith.constant 0 : i32
    %c0_i32_1 = arith.constant 0 : i32
    return %arg0, %c0_i32, %c0_i32_0 : i32, i32, i32
  }
  func.func @transform_13(%arg0: i32) -> (i32, i32, i32, i32) {
    %c0_i32 = arith.constant 0 : i32
    %c0_i32_0 = arith.constant 0 : i32
    %c0_i32_1 = arith.constant 0 : i32
    %c0_i32_2 = arith.constant 0 : i32
    return %arg0, %c0_i32, %c0_i32_0, %c0_i32_1 : i32, i32, i32, i32
  }
}

</mosaic_0001>

<bundles_post_ra>
// kernel: tpu_custom_call.1
= control target key start
LH: loop header
LB: loop body
LE: loop exit
PB: predicated region body
PF: predicated region fallthrough
CT: control target
= control target key end

     0   :  { %s2085_s0 = inlined_call_operand.vmem [shape: f32[2,8,32], index: 0, kind: input, shape index: {}]   ;;  %s2086_s1 = inlined_call_operand.vmem [shape: s32[2,8,8], index: 1, kind: input, shape index: {}]   ;;  %s2087_s2 = inlined_call_operand.vmem [shape: f32[4,32,16], index: 2, kind: input, shape index: {}]   ;;  %s2088_s3 = inlined_call_operand.vmem [shape: f32[4,32,16], index: 3, kind: input, shape index: {}]   ;;  %s2089_s4 = inlined_call_operand.vmem [shape: f32[4,32,16], index: 4, kind: input, shape index: {}]   ;;  %s2090_s5 = inlined_call_operand.vmem [shape: f32[4,16,32], index: 5, kind: input, shape index: {}]   ;;  %s2091_s6 = inlined_call_operand.vmem [shape: f32[1,32], index: 6, kind: input, shape index: {}]   ;;  %s2092_s7 = inlined_call_operand.vmem [shape: f32[1,32], index: 7, kind: input, shape index: {}]   ;;  %s2093_s8 = inlined_call_operand.vmem [shape: f32[32,64], index: 8, kind: input, shape index: {}]   ;;  %s2094_s9 = inlined_call_operand.vmem [shape: f32[64,32], index: 9, kind: input, shape index: {}]   ;;  %s2095_s10 = inlined_call_operand.vmem [shape: f32[1,32], index: 10, kind: input, shape index: {}]   ;;  %s2096_s11 = inlined_call_operand.vmem [shape: f32[1,32], index: 11, kind: input, shape index: {}]   ;;  %s2097_s12 = inlined_call_operand.hbm [shape: f32[2,8,32], index: 12, kind: output, shape index: {0}]   ;;  %s2098_s13 = inlined_call_operand.hbm [shape: f32[2,4,8,8], index: 13, kind: output, shape index: {1}]  }
   0x1   :  { %2103 = sst [smem:[#allocation11_spill]] %s2085_s0 }
   0x2   :  { %2104 = sst [smem:[#allocation12_spill]] %s2086_s1 }
   0x3   :  { %2105 = sst [smem:[#allocation13_spill]] %s2087_s2 }
   0x4   :  { %2106 = sst [smem:[#allocation14_spill]] %s2088_s3 }
   0x5   :  { %2107 = sst [smem:[#allocation15_spill]] %s2089_s4 }
   0x6   :  { %19 = vsyncpa [#allocation3], 0 }
   0x7   :  { %21 = vsyncpa [#allocation3 + $0x1], 0 }
   0x8   :  { %22 = vsyncpa [#allocation5], 0 }
   0x9   :  { %24 = vsyncpa [#allocation5 + $0x1], 0  ;;  %s1676_s25 = smov 0   ;;  %s1678_s26 = smov 0  }
   0xa   :  { %s1680_s27 = smov 0   ;;  %s1682_s28 = smov 0  }
   0xb LB: > { %2108 = sst [smem:[#allocation8_spill]] %s1597_s27  ;;  %s1697_s29 = sadd.s32 4294967295, %s1601_s28   ;;  %s1601_s28 = sphi %s1682_s28, %s2119_s28   ;;  %s1597_s27 = sphi %s1680_s27, %s2121_s27   ;;  %s1593_s26 = sphi %s1678_s26, %s2123_s26   ;;  %s1589_s25 = sphi %s1676_s25, %s2122_s25  }
   0xc   : > { %s1388_s30 = sadd.s32 4294967294, %s1601_s28   ;;  %s1701_s14 = sadd.s32 1, %s1601_s28  }
   0xd   : > { %2109 = sst [smem:[#allocation9_spill]] %s1701_s14  ;;  %s299_s15 = sadd.s32 1, %s1597_s27 }
   0xe   : > { %s296_s16 = ssub.s32 %s1601_s28, %s1701_s14  ;;  %p309_p0 = scmp.ne.s32.totalorder %s1597_s27, %s1593_s26 }
   0xf   : > { %p297_p1 = scmp.eq.s32.totalorder %s296_s16, 0  ;;  %p310_p2 = scmp.eq.s32.totalorder %s1697_s29, 1 }
  0x10   : > { %p315_p3 = scmp.ne.s32.totalorder %s1593_s26, %s1589_s25  ;;  %p316_p4 = scmp.eq.s32.totalorder %s1388_s30, 1 }
  0x11   : > { %s1712_s17 = scalar_select %p297_p1, %s1597_s27, %s299_s15  }
  0x12   : > { %p1714_p5 = por %p310_p2, %p309_p0  ;;  %p1718_p6 = por %p316_p4, %p315_p3 }
  0x13   : > { %2110 = sst [smem:[#allocation10_spill]] %s1712_s17  ;;  %p1391_p7 = scmp.ge.s32.totalorder %s1601_s28, 1 }
  0x14   : > { %p404_p8 = scmp.lt.s32.totalorder %s1601_s28, 3 }
  0x16   : > { %p405_p9 = pnand %p1391_p7, %p404_p8 }
  0x17   : > { %s2113_s2 = sld [smem:[#allocation13_spill]] (!%p405_p9)  ;;  %p456_p10 = scmp.lt.s32.totalorder (!%p405_p9), %s1697_s29, 1 }
  0x18   : > { %408 = sbr.rel (%p405_p9) target bundleno = 1649 (0x671), region = 68  ;;  %s2114_s3 = sld [smem:[#allocation14_spill]] (!%p405_p9) }
  0x19   : > { %s2115_s0 = sld [smem:[#allocation11_spill]] (!%p405_p9) }
  0x1a   : > { %s2116_s4 = sld [smem:[#allocation15_spill]] (!%p405_p9) }
  0x1b   : > { %s2118_s1 = sld [smem:[#allocation12_spill]] (!%p405_p9) }
  0x1d   : > { %v468_v0 = vld [vmem:[%s2113_s2 + $0x18] sm:$0xff]  ;;  %v467_v2 = vld [vmem:[%s2113_s2 + $0x10] sm:$0xff]  ;;  %v466_v5 = vld [vmem:[%s2113_s2 + $0x8] sm:$0xff]  ;;  %s1753_s16 = scalar_select %p456_p10, %s1697_s29, 1  ;;  %vm481_vm0 = vcmask 261120   ;;  %vm760_vm1 = vcmask 130048  }
  0x1e   : > { %v472_v1 = vld [vmem:[%s2113_s2 + $0x38] sm:$0xff]  ;;  %497 = vmatpush.msra.mxu0 %v468_v0  ;;  %v471_v3 = vld [vmem:[%s2113_s2 + $0x30] sm:$0xff]  ;;  %v470_v6 = vld [vmem:[%s2113_s2 + $0x28] sm:$0xff]  ;;  %vm865_vm2 = vcmask 64512   ;;  %vm1189_vm7 = vcmask 523264  }
  0x1f   : > { %517 = vmatpush.msra.mxu2 %v472_v1  ;;  %v572_v4 = vld [vmem:[%s2114_s3 + $0x38] sm:$0xff]  ;;  %v571_v8 = vld [vmem:[%s2114_s3 + $0x30] sm:$0xff]  ;;  %v465_v10 = vld [vmem:[%s2113_s2] sm:$0xff]  ;;  %s2102_s14 = sshll.u32 %s1753_s16, 3  ;;  %s2117_s22 = sshll.u32 %s1753_s16, 3 }
  0x20   : > { %613 = vmatpush.msra.mxu1 %v572_v4  ;;  %v480_v7 = vld [vmem:[%s2113_s2 + $0x78] sm:$0xff]  ;;  %498 = vmatpush.msra.mxu0 %v467_v2  ;;  %v479_v9 = vld [vmem:[%s2113_s2 + $0x70] sm:$0xff]  ;;  %v469_v11 = vld [vmem:[%s2113_s2 + $0x20] sm:$0xff]  ;;  %s459_s17 = scalar_lea.vmem %s2115_s0, %s2102_s14  ;;  %s1926_s16 = sand.u32 1, %s1593_s26  }
  0x21   : > { %518 = vmatpush.msra.mxu2 %v471_v3  ;;  %557 = vmatpush.msra.mxu3 %v480_v7  ;;  %v570_v12 = vld [vmem:[%s2114_s3 + $0x28] sm:$0xff]  ;;  %v1773_v13 = vld [vmem:[%s459_s17] sm:$0xff]  ;;  %v476_v14 = vld [vmem:[%s2113_s2 + $0x58] sm:$0xff]  ;;  %s463_s24 = scalar_lea.vmem %s2118_s1, %s2117_s22  ;;  %s1393_s30 = sshll.u32 %s1926_s16, 5 }
  0x22   : > { %614 = vmatpush.msra.mxu1 %v571_v8  ;;  %499 = vmatpush.msra.mxu0 %v466_v5  ;;  %v568_v15 = vld [vmem:[%s2114_s3 + $0x18] sm:$0xff]  ;;  %v478_v16 = vld [vmem:[%s2113_s2 + $0x68] sm:$0xff]  ;;  %v569_v17 = vld [vmem:[%s2114_s3 + $0x20] sm:$0xff]  ;;  %s1933_s17 = scalar_lea.vmem [#allocation4], %s1393_s30  ;;  %s1433_s22 = sshll.u32 %s1697_s29, 5 }
  0x23   : > { %519 = vmatpush.msra.mxu2 %v470_v6  ;;  %558 = vmatpush.msra.mxu3 %v479_v9  ;;  %v475_v18 = vld [vmem:[%s2113_s2 + $0x50] sm:$0xff]  ;;  %v477_v20 = vld [vmem:[%s2113_s2 + $0x60] sm:$0xff]  ;;  %v474_v21 = vld [vmem:[%s2113_s2 + $0x48] sm:$0xff]  ;;  %s1277_s14 = scalar_lea.hbm %s2098_s13, %s1433_s22  ;;  %s1252_s15 = scalar_lea.sflag [#allocation5], %s1926_s16 }
  0x24   : > { %615 = vmatpush.msra.mxu1 %v570_v12  ;;  %500 = vmatpush.msra.mxu0 %v465_v10  ;;  %v567_v19 = vld [vmem:[%s2114_s3 + $0x10] sm:$0xff]  ;;  %v566_v22 = vld [vmem:[%s2114_s3 + $0x8] sm:$0xff]  ;;  %v580_v23 = vld [vmem:[%s2114_s3 + $0x78] sm:$0xff]  ;;  %s1280_s30 = sshll.u32 %s1277_s14, 4  ;;  %s1281_s30 = int_to_ptr.hbm [resolvable:$true] %s1280_s30 }
  0x25   : > { %520 = vmatpush.msra.mxu2 %v469_v11  ;;  %1396 = vmatmul.msk.f32.vlgmr.msra.gmra.mxu0 %vm481_vm0, %v1773_v13  ;;  %v473_v24 = vld [vmem:[%s2113_s2 + $0x40] sm:$0xff]  ;;  %v668_v26 = vld [vmem:[%s2116_s4 + $0x38] sm:$0xff]  ;;  %v579_v27 = vld [vmem:[%s2114_s3 + $0x70] sm:$0xff]  ;;  %s1521_s27 = sshra.s32 %s1281_s30, 4  ;;  %s1527_s2 = scalar_lea.hbm %s2098_s13, 64  ;;  %s1522_s27 = int_to_ptr.hbm [resolvable:$true] %s1521_s27 }
  0x26   : > { %1397 = vmatmul.msk.f32.vlgmr.msra.gmra.mxu2 %vm481_vm0, %v1773_v13  ;;  %593 = vmatpush.msrb.mxu0 %v568_v15  ;;  %v565_v25 = vld [vmem:[%s2114_s3] sm:$0xff]  ;;  %v576_v28 = vld [vmem:[%s2114_s3 + $0x58] sm:$0xff]  ;;  %v667_v29 = vld [vmem:[%s2116_s4 + $0x30] sm:$0xff]  ;;  %s1523_s20 = scalar_lea.hbm %s1522_s27, 32  ;;  %p1528_p0 = scmp.lt.s32.totalorder %s1522_s27, %s2098_s13 }
  0x27   : > { %537 = vmatpush.msrb.mxu2 %v476_v14  ;;  %559 = vmatpush.msra.mxu3 %v478_v16  ;;  %v578_v30 = vld [vmem:[%s2114_s3 + $0x68] sm:$0xff]  ;;  %v664_v31 = vld [vmem:[%s2116_s4 + $0x18] sm:$0xff]  ;;  %v575_v32 = vld [vmem:[%s2114_s3 + $0x50] sm:$0xff]  ;;  %p1524_p11 = scmp.ne.s32.totalorder %s1522_s27, %s1523_s20  ;;  %p1529_p1 = scmp.lt.s32.totalorder %s1527_s2, %s1523_s20 }
  0x28   : > { %616 = vmatpush.msra.mxu1 %v569_v17  ;;  %594 = vmatpush.msrb.mxu0 %v567_v19  ;;  %v666_v33 = vld [vmem:[%s2116_s4 + $0x28] sm:$0xff]  ;;  %v577_v34 = vld [vmem:[%s2114_s3 + $0x60] sm:$0xff]  ;;  %v663_v35 = vld [vmem:[%s2116_s4 + $0x10] sm:$0xff] }
  0x29   : > { %538 = vmatpush.msrb.mxu2 %v475_v18  ;;  %1401 = vmatmul.msk.f32.vlgmr.msra.gmra.mxu1 %vm481_vm0, %v1773_v13  ;;  %v574_v36 = vld [vmem:[%s2114_s3 + $0x48] sm:$0xff]  ;;  %v665_v37 = vld [vmem:[%s2116_s4 + $0x20] sm:$0xff]  ;;  %v676_v41 = vld [vmem:[%s2116_s4 + $0x78] sm:$0xff]  ;;  %p1525_p12 = pnand %p1524_p11, %p1714_p5  ;;  %p1530_p2 = por %p1529_p1, %p1528_p0 }
  0x2a   : > { %560 = vmatpush.msra.mxu3 %v477_v20  ;;  %595 = vmatpush.msrb.mxu0 %v566_v22  ;;  %v573_v38 = vld [vmem:[%s2114_s3 + $0x40] sm:$0xff]  ;;  %v662_v39 = vld [vmem:[%s2116_s4 + $0x8] sm:$0xff]  ;;  %v675_v42 = vld [vmem:[%s2116_s4 + $0x70] sm:$0xff] }
  0x2b   : > { %539 = vmatpush.msrb.mxu2 %v474_v21  ;;  %1399 = vmatmul.msk.f32.vlgmr.msra.gmra.mxu3 %vm481_vm0, %v1773_v13  ;;  %v661_v40 = vld [vmem:[%s2116_s4] sm:$0xff]  ;;  %v672_v43 = vld [vmem:[%s2116_s4 + $0x58] sm:$0xff]  ;;  %v674_v44 = vld [vmem:[%s2116_s4 + $0x68] sm:$0xff]  ;;  %p1526_p13 = pneg %p1525_p12 }
  0x2c   : > { %653 = vmatpush.msrb.mxu3 %v580_v23  ;;  %709 = vmatpush.msrb.mxu1 %v668_v26  ;;  %v671_v45 = vld [vmem:[%s2116_s4 + $0x50] sm:$0xff]  ;;  %v673_v46 = vld [vmem:[%s2116_s4 + $0x60] sm:$0xff]  ;;  %v670_v47 = vld [vmem:[%s2116_s4 + $0x48] sm:$0xff] }
  0x2d   : > { %540 = vmatpush.msrb.mxu2 %v473_v24  ;;  %596 = vmatpush.msrb.mxu0 %v565_v25  ;;  %v669_v48 = vld [vmem:[%s2116_s4 + $0x40] sm:$0xff]  ;;  %p1531_p3 = pnand %p1530_p2, %p1526_p13 }
  0x2e   : > { %1398 = vmatmul.msk.f32.vlgmr.msrb.gmra.mxu2 %vm481_vm0, %v1773_v13  ;;  %1400 = vmatmul.msk.f32.vlgmr.msrb.gmra.mxu0 %vm481_vm0, %v1773_v13  ;;  %v757_v61 = vld [vmem:[%s463_s24] sm:$0xff]  ;;  %s1278_s24 = sshll.u32 %s1933_s17, 4  ;;  %s1279_s24 = int_to_ptr.vmem [resolvable:$true] %s1278_s24 }
  0x2f   : > { %654 = vmatpush.msrb.mxu3 %v579_v27  ;;  %633 = vmatpush.msra.mxu2 %v576_v28  ;;  %v758_v62 = vcvt.s32.f32 %v757_v61 }
  0x30   : > { %710 = vmatpush.msrb.mxu1 %v667_v29  ;;  %689 = vmatpush.msra.mxu0 %v664_v31 }
  0x31   : > { %655 = vmatpush.msrb.mxu3 %v578_v30  ;;  %634 = vmatpush.msra.mxu2 %v575_v32  ;;  %v759_v63 = vmul.f32 -1e+09, %v758_v62 }
  0x32   : > { %711 = vmatpush.msrb.mxu1 %v666_v33  ;;  %690 = vmatpush.msra.mxu0 %v663_v35 }
  0x33   : > { %656 = vmatpush.msrb.mxu3 %v577_v34  ;;  %635 = vmatpush.msra.mxu2 %v574_v36  ;;  %v1007_v34 = vld [vmem:[%s2090_s5 + $0x8] sm:$0xff] }
  0x34   : > { %1403 = vmatmul.msk.f32.vlgmr.msrb.gmra.mxu3 %vm481_vm0, %v1773_v13  ;;  %712 = vmatpush.msrb.mxu1 %v665_v37 }
  0x35   : > { %636 = vmatpush.msra.mxu2 %v573_v38  ;;  %1405 = vmatmul.msk.f32.vlgmr.msrb.gmra.mxu1 %vm481_vm0, %v1773_v13 }
  0x36   : > { %1402 = vmatmul.msk.f32.vlgmr.msra.gmra.mxu2 %vm481_vm0, %v1773_v13  ;;  %691 = vmatpush.msra.mxu0 %v662_v39 }
  0x37   : > { %749 = vmatpush.msra.mxu3 %v676_v41  ;;  %729 = vmatpush.msrb.mxu2 %v672_v43 }
  0x38   : > { %692 = vmatpush.msra.mxu0 %v661_v40 }
  0x39   : > { %1404 = vmatmul.msk.f32.vlgmr.msra.gmra.mxu0 %vm481_vm0, %v1773_v13  ;;  %750 = vmatpush.msra.mxu3 %v675_v42 }
  0x3a   : > { %730 = vmatpush.msrb.mxu2 %v671_v45 }
  0x3b   : > { %751 = vmatpush.msra.mxu3 %v674_v44 }
  0x3c   : > { %731 = vmatpush.msrb.mxu2 %v670_v47  ;;  %v1009_v47 = vld [vmem:[%s2090_s5 + $0x18] sm:$0xff] }
  0x3d   : > { %752 = vmatpush.msra.mxu3 %v673_v46  ;;  %v1006_v46 = vld [vmem:[%s2090_s5] sm:$0xff] }
  0x3e   : > { %1407 = vmatmul.msk.f32.vlgmr.msra.gmra.mxu3 %vm481_vm0, %v1773_v13  ;;  %732 = vmatpush.msrb.mxu2 %v669_v48  ;;  %v1008_v48 = vld [vmem:[%s2090_s5 + $0x10] sm:$0xff] }
  0x3f   : > { %1406 = vmatmul.msk.f32.vlgmr.msrb.gmra.mxu2 %vm481_vm0, %v1773_v13 }
  0xa2   : > { %v502_v49 = vpop.f32.mrf.mxu0 }
  0xa6   : > { %v618_v50 = vpop.f32.mrf.mxu1 }
  0xa7   : > { %1410 = vmatpush.xpose.msk.msra.mxu1 %vm760_vm1, %v618_v50  ;;  %v1010_v50 = vld [vmem:[%s2090_s5 + $0x20] sm:$0xff] }
  0xa9   : > { %v522_v51 = vpop.f32.mrf.mxu2 }
  0xaa   : > { %1411 = vmatmul.msk.f32.vlgmr.msra.gmra.mxu1 %vm760_vm1, %v522_v51  ;;  %v1013_v51 = vld [vmem:[%s2090_s5 + $0x38] sm:$0xff] }
  0xab   : > { %v598_v52 = vpop.f32.mrf.mxu0 }
  0xac   : > { %1408 = vmatpush.xpose.msk.msrb.mxu0 %vm760_vm1, %v598_v52 }
  0xae   : > { %v562_v53 = vpop.f32.mrf.mxu3 }
  0xaf   : > { %1409 = vmatmul.msk.f32.vlgmr.msrb.gmra.mxu0 %vm760_vm1, %v502_v49  ;;  %v1011_v49 = vld [vmem:[%s2090_s5 + $0x28] sm:$0xff] }
  0xb1   : > { %v542_v54 = vpop.f32.mrf.mxu2 }
  0xb2   : > { %v714_v55 = vpop.f32.mrf.mxu1 }
  0xb3   : > { %955 = vmatpush.msrb.mxu1 %v714_v55 }
  0xb5   : > { %1054 = vmatpush.msra.mxu1 %v1009_v47 }
  0xb6   : > { %v694_v58 = vpop.f32.mrf.mxu0 }
  0xb7   : > { %v658_v56 = vpop.f32.mrf.mxu3  ;;  %932 = vmatpush.msra.mxu0 %v694_v58  ;;  %1055 = vmatpush.msra.mxu1 %v1008_v48 }
  0xb8   : > { %1414 = vmatpush.xpose.msk.msrb.mxu3 %vm760_vm1, %v658_v56 }
  0xb9   : > { %v638_v57 = vpop.f32.mrf.mxu2  ;;  %1031 = vmatpush.msrb.mxu0 %v1007_v34 }
  0xba   : > { %1412 = vmatpush.xpose.msk.msra.mxu2 %vm760_vm1, %v638_v57 }
  0xbb   : > { %1415 = vmatmul.msk.f32.vlgmr.msrb.gmra.mxu3 %vm760_vm1, %v562_v53  ;;  %1032 = vmatpush.msrb.mxu0 %v1006_v46  ;;  %v1012_v53 = vld [vmem:[%s2090_s5 + $0x30] sm:$0xff] }
  0xbd   : > { %1413 = vmatmul.msk.f32.vlgmr.msra.gmra.mxu2 %vm760_vm1, %v542_v54 }
  0xc1   : > { %v754_v59 = vpop.f32.mrf.mxu3 }
  0xc2   : > { %1001 = vmatpush.msra.mxu3 %v754_v59  ;;  %v734_v60 = vpop.f32.mrf.mxu2 }
  0xc3   : > { %978 = vmatpush.msrb.mxu2 %v734_v60 }
  0xc4   : > { %1100 = vmatpush.msrb.mxu3 %v1013_v51 }
  0xc5   : > { %1077 = vmatpush.msra.mxu2 %v1011_v49 }
  0xc6   : > { %1101 = vmatpush.msrb.mxu3 %v1012_v53 }
  0xc7   : > { %1078 = vmatpush.msra.mxu2 %v1010_v50 }
 0x127   : > { %v810_v3 = vpop.f32.mrf.mxu1 }
 0x128   : > { %v811_v4 = vadd.f32 %v810_v3, %v759_v63 }
 0x12a   : > { %v869_v5 = vsel %vm865_vm2, %v811_v4, -inf }
 0x12c   : > { %v784_v0 = vpop.f32.mrf.mxu0 }
 0x12d   : > { %v785_v1 = vadd.f32 %v784_v0, %v759_v63 }
 0x12f   : > { %v866_v2 = vsel %vm865_vm2, %v785_v1, -inf }
 0x130   : > { %867 = vmax.xlane.f32.xlu1 %v866_v2 }
 0x138   : > { %870 = vmax.xlane.f32.xlu1 %v869_v5 }
 0x13e   : > { %v862_v9 = vpop.f32.mrf.mxu3 }
 0x13f   : > { %v863_v10 = vadd.f32 %v862_v9, %v759_v63 }
 0x140   : > { %v836_v6 = vpop.f32.mrf.mxu2 }
 0x141   : > { %v837_v7 = vadd.f32 %v836_v6, %v759_v63  ;;  %v875_v11 = vsel %vm865_vm2, %v863_v10, -inf  ;;  %v1603_v6 = vmov 32.0  }
 0x143   : > { %v872_v8 = vsel %vm865_vm2, %v837_v7, -inf }
 0x144   : > { %873 = vmax.xlane.f32.xlu0 %v872_v8 }
 0x14c   : > { %876 = vmax.xlane.f32.xlu0 %v875_v11 }
 0x1a3   : > { %v868_v12 = vpop.xlane.xlu1 %867 }
 0x1a4   : > { %v878_v14 = vsub.f32 %v785_v1, %v868_v12 }
 0x1a6   : > { %v882_v15 = vmul.f32 1.442695, %v878_v14 }
 0x1a8   : > { %1485 = vpow2.f32 %v882_v15 }
 0x1ab   : > { %v871_v16 = vpop.xlane.xlu1 %870 }
 0x1ac   : > { %v879_v17 = vsub.f32 %v811_v4, %v871_v16 }
 0x1ae   : > { %v1486_v18 = vpop.eup %1485  ;;  %v884_v19 = vmul.f32 1.442695, %v879_v17 }
 0x1af   : > { %v890_v20 = vsel %vm865_vm2, %v1486_v18, 0.0 }
 0x1b0   : > { %1487 = vpow2.f32 %v884_v19  ;;  %891 = vadd.xlane.f32.xlu0 %v890_v20  ;;  %v1155_v19 = vld [vmem:[%s2093_s8 + $0x10] sm:$0xff]  ;;  %v1154_v20 = vld [vmem:[%s2093_s8 + $0x8] sm:$0xff] }
 0x1b6   : > { %v1488_v21 = vpop.eup %1487 }
 0x1b7   : > { %v874_v22 = vpop.xlane.xlu0 %873  ;;  %v893_v23 = vsel %vm865_vm2, %v1488_v21, 0.0 }
 0x1b8   : > { %v880_v24 = vsub.f32 %v837_v7, %v874_v22  ;;  %894 = vadd.xlane.f32.xlu1 %v893_v23  ;;  %v1188_v22 = vld [vmem:[%s2094_s9 + $0x38] sm:$0xff]  ;;  %v1187_v23 = vld [vmem:[%s2094_s9 + $0x30] sm:$0xff] }
 0x1ba   : > { %v886_v25 = vmul.f32 1.442695, %v880_v24  ;;  %v1186_v24 = vld [vmem:[%s2094_s9 + $0x28] sm:$0xff] }
 0x1bc   : > { %1489 = vpow2.f32 %v886_v25 }
 0x1bf   : > { %v877_v26 = vpop.xlane.xlu0 %876 }
 0x1c0   : > { %v881_v27 = vsub.f32 %v863_v10, %v877_v26 }
 0x1c2   : > { %v1490_v28 = vpop.eup %1489  ;;  %v888_v29 = vmul.f32 1.442695, %v881_v27  ;;  %v1185_v27 = vld [vmem:[%s2094_s9 + $0x20] sm:$0xff] }
 0x1c3   : > { %v896_v30 = vsel %vm865_vm2, %v1490_v28, 0.0 }
 0x1c4   : > { %1491 = vpow2.f32 %v888_v29  ;;  %897 = vadd.xlane.f32.xlu2 %v896_v30  ;;  %v1184_v29 = vld [vmem:[%s2094_s9 + $0x18] sm:$0xff]  ;;  %v1183_v30 = vld [vmem:[%s2094_s9 + $0x10] sm:$0xff] }
 0x1ca   : > { %v1492_v31 = vpop.eup %1491 }
 0x1cb   : > { %v899_v32 = vsel %vm865_vm2, %v1492_v31, 0.0 }
 0x1cc   : > { %900 = vadd.xlane.f32.xlu2 %v899_v32 }
 0x223   : > { %v892_v33 = vpop.xlane.xlu0 %891 }
 0x224   : > { %1493 = vrcp.f32 %v892_v33 }
 0x22a   : > { %v1494_v35 = vpop.eup %1493 }
 0x22b   : > { %v906_v36 = vmul.f32 %v1494_v35, %v1486_v18  ;;  %v895_v37 = vpop.xlane.xlu1 %894  ;;  %v1156_v18 = vld [vmem:[%s2093_s8 + $0x18] sm:$0xff] }
 0x22c   : > { %1495 = vrcp.f32 %v895_v37  ;;  %v1481_v37 = vld [vmem:[%s2091_s6] ss:$0 sm:$0xff] }
 0x22d   : > { %1416 = vmatmul.msk.f32.vlgmr.msra.gmra.mxu0 %vm865_vm2, %v906_v36  ;;  %910 = vst.msk [vmem:[%s1933_s17] sm:$0xff] %vm865_vm2, %v906_v36 }
 0x22e   : > { %1172 = vmatpush.msra.mxu0 %v1156_v18 }
 0x230   : > { %1173 = vmatpush.msra.mxu0 %v1155_v19 }
 0x232   : > { %v1496_v38 = vpop.eup %1495  ;;  %1174 = vmatpush.msra.mxu0 %v1154_v20 }
 0x233   : > { %v907_v39 = vmul.f32 %v1496_v38, %v1488_v21  ;;  %v1153_v21 = vld [vmem:[%s2093_s8] sm:$0xff] }
 0x234   : > { %1175 = vmatpush.msra.mxu0 %v1153_v21 }
 0x235   : > { %1417 = vmatmul.msk.f32.vlgmr.msrb.gmra.mxu1 %vm865_vm2, %v907_v39  ;;  %911 = vst.msk [vmem:[%s1933_s17 + $0x8] sm:$0xff] %vm865_vm2, %v907_v39 }
 0x236   : > { %1201 = vmatpush.msrb.mxu1 %v1188_v22 }
 0x237   : > { %v898_v40 = vpop.xlane.xlu2 %897 }
 0x238   : > { %1497 = vrcp.f32 %v898_v40  ;;  %1202 = vmatpush.msrb.mxu1 %v1187_v23  ;;  %v1482_v40 = vld [vmem:[%s2092_s7] ss:$0 sm:$0xff] }
 0x23a   : > { %1203 = vmatpush.msrb.mxu1 %v1186_v24 }
 0x23c   : > { %1204 = vmatpush.msrb.mxu1 %v1185_v27 }
 0x23e   : > { %v1498_v41 = vpop.eup %1497  ;;  %1205 = vmatpush.msrb.mxu1 %v1184_v29 }
 0x23f   : > { %v908_v42 = vmul.f32 %v1498_v41, %v1490_v28  ;;  %v901_v43 = vpop.xlane.xlu2 %900 }
 0x240   : > { %1499 = vrcp.f32 %v901_v43  ;;  %1206 = vmatpush.msrb.mxu1 %v1183_v30  ;;  %v1182_v43 = vld [vmem:[%s2094_s9 + $0x8] sm:$0xff] }
 0x241   : > { %1418 = vmatmul.msk.f32.vlgmr.msrb.gmra.mxu2 %vm865_vm2, %v908_v42  ;;  %912 = vst.msk [vmem:[%s1933_s17 + $0x10] sm:$0xff] %vm865_vm2, %v908_v42  ;;  %1501 = vrcp.f32 %v1603_v6 }
 0x242   : > { %1207 = vmatpush.msrb.mxu1 %v1182_v43 }
 0x246   : > { %v1500_v44 = vpop.eup %1499 }
 0x247   : > { %v909_v45 = vmul.f32 %v1500_v44, %v1492_v31  ;;  %v1502_v7 = vpop.eup %1501  ;;  %v1181_v44 = vld [vmem:[%s2094_s9] sm:$0xff] }
 0x248   : > { %v1120_v8 = vmul.f32 32.0, %v1502_v7  ;;  %vm1124_vm3 = vweird.f32 %v1502_v7  ;;  %1208 = vmatpush.msrb.mxu1 %v1181_v44 }
 0x249   : > { %1419 = vmatmul.msk.f32.vlgmr.msra.gmra.mxu3 %vm865_vm2, %v909_v45  ;;  %913 = vst.msk [vmem:[%s1933_s17 + $0x18] sm:$0xff] %vm865_vm2, %v909_v45 }
 0x24a   : > { %v1121_v9 = vsub.f32 1.0, %v1120_v8 }
 0x24c   : > { %v1122_v10 = vmul.f32 %v1502_v7, %v1121_v9 }
 0x24e   : > { %v1123_v11 = vadd.f32 %v1502_v7, %v1122_v10 }
 0x250   : > { %v1977_v12 = vsel %vm1124_vm3, %v1502_v7, %v1123_v11 }
 0x2aa   : > { %v934_v52 = vpop.f32.mrf.mxu0 }
 0x2ab   : > { %1420 = vmatmul.msk.f32.vlgmr.msrb.gmra.mxu0 %vm760_vm1, %v934_v52 }
 0x2b2   : > { %v957_v54 = vpop.f32.mrf.mxu1 }
 0x2b3   : > { %1421 = vmatmul.msk.f32.vlgmr.msra.gmra.mxu1 %vm760_vm1, %v957_v54 }
 0x2c4   : > { %v980_v55 = vpop.f32.mrf.mxu2 }
 0x2c5   : > { %1422 = vmatmul.msk.f32.vlgmr.msra.gmra.mxu2 %vm760_vm1, %v980_v55 }
 0x2cc   : > { %v1003_v56 = vpop.f32.mrf.mxu3 }
 0x2cd   : > { %1423 = vmatmul.msk.f32.vlgmr.msrb.gmra.mxu3 %vm760_vm1, %v1003_v56 }
 0x328   : > { %v1034_v58 = vpop.f32.mrf.mxu0 }
 0x329   : > { %v1106_v61 = vsel %vm481_vm0, %v1034_v58, 0.0 }
 0x330   : > { %v1057_v57 = vpop.f32.mrf.mxu1 }
 0x331   : > { %v1107_v60 = vsel %vm481_vm0, %v1057_v57, 0.0 }
 0x332   : > { %v1108_v63 = vadd.f32 %v1107_v60, %v1106_v61 }
 0x348   : > { %v1080_v59 = vpop.f32.mrf.mxu2 }
 0x349   : > { %v1109_v62 = vsel %vm481_vm0, %v1080_v59, 0.0 }
 0x34a   : > { %v1110_v0 = vadd.f32 %v1109_v62, %v1108_v63 }
 0x350   : > { %v1103_v1 = vpop.f32.mrf.mxu3 }
 0x351   : > { %v1111_v2 = vsel %vm481_vm0, %v1103_v1, 0.0 }
 0x352   : > { %v1112_v3 = vadd.f32 %v1111_v2, %v1110_v0 }
 0x354   : > { %v1113_v4 = vadd.f32 %v1112_v3, %v1773_v13 }
 0x356   : > { %v1116_v5 = vsel %vm481_vm0, %v1113_v4, 0.0 }
 0x357   : > { %1117 = vadd.xlane.f32.xlu2 %v1116_v5 }
 0x3ca   : > { %v1118_v14 = vpop.xlane.xlu2 %1117 }
 0x3cb   : > { %v1126_v15 = vmul.f32 %v1977_v12, %v1118_v14 }
 0x3cd   : > { %v1127_v16 = vsub.f32 %v1113_v4, %v1126_v15 }
 0x3cf   : > { %v1128_v17 = vmul.f32 %v1127_v16, %v1127_v16 }
 0x3d1   : > { %v1129_v13 = vsel %vm481_vm0, %v1128_v17, 0.0 }
 0x3d2   : > { %1130 = vadd.xlane.f32.xlu0 %v1129_v13 }
 0x445   : > { %v1131_v25 = vpop.xlane.xlu0 %1130 }
 0x446   : > { %v1132_v26 = vmul.f32 %v1131_v25, %v1977_v12 }
 0x448   : > { %v1133_v28 = vadd.f32 1e-05, %v1132_v26 }
 0x44a   : > { %1503 = vrsqrt.f32 %v1133_v28  ;;  %vm1140_vm5 = vweird.f32 %v1133_v28 }
 0x450   : > { %v1504_v31 = vpop.eup %1503 }
 0x451   : > { %v1135_v32 = vmul.f32 %v1504_v31, %v1133_v28  ;;  %vm1141_vm4 = vweird.f32 %v1504_v31 }
 0x452   : > { %vm1142_vm6 = vmor %vm1140_vm5, %vm1141_vm4 }
 0x453   : > { %v1136_v33 = vmul.f32 %v1504_v31, %v1135_v32 }
 0x455   : > { %v1137_v34 = vmul.f32 0.5, %v1136_v33 }
 0x457   : > { %v1138_v35 = vsub.f32 1.5, %v1137_v34 }
 0x459   : > { %v1139_v36 = vmul.f32 %v1504_v31, %v1138_v35 }
 0x45b   : > { %v1143_v38 = vsel %vm1142_vm6, %v1504_v31, %v1139_v36 }
 0x45c   : > { %v1144_v39 = vmul.f32 %v1143_v38, %v1127_v16 }
 0x45e   : > { %v1148_v41 = vmul.f32 %v1481_v37, %v1144_v39 }
 0x460   : > { %v1152_v42 = vadd.f32 %v1482_v40, %v1148_v41 }
 0x462   : > { %1424 = vmatmul.msk.f32.vlgmr.msra.gmra.mxu0 %vm481_vm0, %v1152_v42 }
 0x4df   : > { %v1177_v45 = vpop.f32.mrf.mxu0 }
 0x4e0   : > { %v1180_v46 = vmax.f32 %v1177_v45, 0.0 }
 0x4e2   : > { %1425 = vmatmul.msk.f32.vlgmr.msrb.gmra.mxu1 %vm1189_vm7, %v1180_v46 }
 0x55f   : > { %v1210_v47 = vpop.f32.mrf.mxu1 }
 0x560   : > { %v1211_v48 = vadd.f32 %v1210_v47, %v1152_v42 }
 0x562   : > { %v1215_v49 = vsel %vm481_vm0, %v1211_v48, 0.0 }
 0x563   : > { %1216 = vadd.xlane.f32.xlu1 %v1215_v49 }
 0x5d6   : > { %v1217_v50 = vpop.xlane.xlu1 %1216 }
 0x5d7   : > { %v1218_v51 = vmul.f32 %v1217_v50, %v1977_v12 }
 0x5d9   : > { %v1219_v52 = vsub.f32 %v1211_v48, %v1218_v51 }
 0x5db   : > { %v1220_v53 = vmul.f32 %v1219_v52, %v1219_v52 }
 0x5dd   : > { %v1221_v54 = vsel %vm481_vm0, %v1220_v53, 0.0 }
 0x5de   : > { %1222 = vadd.xlane.f32.xlu2 %v1221_v54 }
 0x5df   : > { %1534 = shalt.err (!%p1531_p3)
}
 0x5e0   : > { %s1604_s17 = smov 128   ;;  %s1605_s22 = smov 8   ;;  %v1483_v0 = vld [vmem:[%s2095_s10] ss:$0 sm:$0xff] }
 0x5e1   : > { %1435 = dma.vmem_to_hbm [thread:$0]  (%p1714_p5), %s1279_s24, 512, %s1281_s30, %s1252_s15, %s1604_s17, %s1604_s17, %s1605_s22  }
 0x5e2   : > { %s1392_s1 = sshll.u32 %s1926_s16, 3  ;;  %s1428_s2 = sshll.u32 %s1697_s29, 3  ;;  %v1484_v3 = vld [vmem:[%s2096_s11] ss:$0 sm:$0xff] }
 0x5e3   : > { %s1262_s14 = scalar_lea.hbm %s2097_s12, %s1428_s2  ;;  %s448_s29 = scalar_lea.vmem [#allocation2], %s1392_s1 }
 0x5e4   : > { %s1264_s15 = sshll.u32 %s448_s29, 4  ;;  %s1266_s27 = sshll.u32 %s1262_s14, 4  ;;  %s1265_s15 = int_to_ptr.vmem [resolvable:$true] %s1264_s15  ;;  %s1267_s27 = int_to_ptr.hbm [resolvable:$true] %s1266_s27 }
 0x5e5   : > { %s1247_s20 = scalar_lea.sflag [#allocation3], %s1926_s16  ;;  %s1549_s21 = sshra.s32 %s1267_s27, 4  ;;  %s1550_s21 = int_to_ptr.hbm [resolvable:$true] %s1549_s21 }
 0x5e6   : > { %s1551_s17 = scalar_lea.hbm %s1550_s21, 8  ;;  %s1555_s1 = scalar_lea.hbm %s2097_s12, 16 }
 0x5e7   : > { %p1552_p4 = scmp.ne.s32.totalorder %s1550_s21, %s1551_s17  ;;  %p1556_p9 = scmp.lt.s32.totalorder %s1550_s21, %s2097_s12 }
 0x5e8   : > { %p1557_p10 = scmp.lt.s32.totalorder %s1555_s1, %s1551_s17 }
 0x5e9   : > { %p1553_p7 = pnand %p1552_p4, %p1714_p5 }
 0x5ea   : > { %p1558_p11 = por %p1557_p10, %p1556_p9 }
 0x5eb   : > { %p1554_p8 = pneg %p1553_p7 }
 0x5ed   : > { %p1559_p12 = pnand %p1558_p11, %p1554_p8 }
 0x651   : > { %v1223_v55 = vpop.xlane.xlu2 %1222 }
 0x652   : > { %v1224_v56 = vmul.f32 %v1223_v55, %v1977_v12 }
 0x654   : > { %v1225_v57 = vadd.f32 1e-05, %v1224_v56 }
 0x656   : > { %1505 = vrsqrt.f32 %v1225_v57  ;;  %vm1232_vm9 = vweird.f32 %v1225_v57 }
 0x65c   : > { %v1506_v58 = vpop.eup %1505 }
 0x65d   : > { %v1227_v59 = vmul.f32 %v1506_v58, %v1225_v57  ;;  %vm1233_vm8 = vweird.f32 %v1506_v58 }
 0x65e   : > { %vm1234_vm10 = vmor %vm1232_vm9, %vm1233_vm8 }
 0x65f   : > { %v1228_v60 = vmul.f32 %v1506_v58, %v1227_v59 }
 0x661   : > { %v1229_v61 = vmul.f32 0.5, %v1228_v60 }
 0x663   : > { %v1230_v62 = vsub.f32 1.5, %v1229_v61 }
 0x665   : > { %v1231_v63 = vmul.f32 %v1506_v58, %v1230_v62 }
 0x667   : > { %v1235_v1 = vsel %vm1234_vm10, %v1506_v58, %v1231_v63 }
 0x668   : > { %v1236_v2 = vmul.f32 %v1235_v1, %v1219_v52 }
 0x66a   : > { %v1240_v4 = vmul.f32 %v1483_v0, %v1236_v2 }
 0x66c   : > { %v1244_v5 = vadd.f32 %v1484_v3, %v1240_v4 }
 0x66e   : > { %1245 = vst.msk [vmem:[%s448_s29] sm:$0xff] %vm481_vm0, %v1244_v5 }
 0x66f   : > { %1562 = shalt.err (!%p1559_p12)
}
 0x670   : > { %1434 = dma.vmem_to_hbm [thread:$0]  (%p1714_p5), %s1265_s15, 128, %s1267_s27, %s1247_s20  }
 0x671 PF: > { %p1445_p13 = scmp.ge.s32.totalorder %s1601_s28, 2  ;;  %s1295_s16 = sand.u32 1, %s1589_s25  }
 0x672   : > { %s1296_s23 = scalar_lea.sflag [#allocation3], %s1295_s16 }
 0x673   : > { %p1439_p0 = pnand %p1445_p13, %p1718_p6 }
 0x675   : > { %p1440_p1 = pneg %p1439_p0 }
 0x677   : > { %1580 = dma.done.wait (%p1440_p1), %s1296_s23, 128  }
 0x678   : > { %1582 = vsyncadd (%p1440_p1), %s1296_s23, 4294967168  ;;  %s1306_s0 = scalar_lea.sflag [#allocation5], %s1295_s16 }
 0x679   : > { %1584 = dma.done.wait (%p1440_p1), %s1306_s0, 512  }
 0x67a   : > { %1586 = vsyncadd (%p1440_p1), %s1306_s0, 4294966784  ;;  %s2119_s28 = sld [smem:[#allocation9_spill]]  ;;  %s2122_s25 = smov %s1593_s26 }
 0x67b   : > { %s2120_s14 = sld [smem:[#allocation8_spill]] }
 0x67c   : > { %s2121_s27 = sld [smem:[#allocation10_spill]] }
 0x680   : > { %p27_p5 = scmp.ge.s32.totalorder %s2119_s28, 4  }
 0x681   : > { %s2123_s26 = smov %s2120_s14 }
 0x682   :  { %29 = sbr.rel (!%p27_p5) target bundleno = 11 (0xb), region = 123 }
 0x687   :  { %1312 = vsyncpa [#allocation3], 1 }
 0x688   :  { %1314 = vsyncpa [#allocation3 + $0x1], 1 }
 0x689   :  { %1315 = vsyncpa [#allocation5], 1 }
 0x68a   :  { %1317 = vsyncpa [#allocation5 + $0x1], 1 }

</bundles_post_ra>
